<compile_context>
chip_gen: v6e
topology: v6e:2x2x1
jax: 0.10.0
libtpu: 0.0.40
codegen_flags: <defaults>
</compile_context>

<pallas_src>
import functools

import jax
import jax.numpy as jnp
from jax.experimental import pallas as pl
from jax.experimental.pallas import tpu as pltpu


def _news_node_kernel(title_ref, content_ref, wt_ref, bt_ref, wc_ref, bc_ref,
                      o_ref, *, use_bf16):
    t_in, wt = title_ref[...], wt_ref[...]
    c_in, wc = content_ref[...], wc_ref[...]
    if use_bf16:
        t_in, wt = t_in.astype(jnp.bfloat16), wt.astype(jnp.bfloat16)
        c_in, wc = c_in.astype(jnp.bfloat16), wc.astype(jnp.bfloat16)
    titles = jnp.dot(t_in, wt, preferred_element_type=jnp.float32) + bt_ref[...]
    contents = jnp.dot(c_in, wc, preferred_element_type=jnp.float32) + bc_ref[...]
    # Single lane-dense store of the already-concatenated block (no separate
    # XLA concat, no two narrow masked stores).
    o_ref[...] = jnp.concatenate([titles, contents], axis=-1).astype(o_ref.dtype)


def news_node_forward(title, content, params, *, block_rows=256, use_bf16=False):
    """cat([title @ Wt + bt, content @ Wc + bc], axis=-1) in one Pallas kernel."""
    wt, bt = params["title"]["w"], params["title"]["b"]
    wc, bc = params["content"]["w"], params["content"]["b"]
    n, e_t = title.shape
    e_c = content.shape[1]
    h_half = wt.shape[1]
    hidden = 2 * h_half

    # Row tile: multiple of 8 (sublane requirement), capped by block_rows.
    tm = min(block_rows, max(8, pl.next_power_of_2(n)))
    n_pad = pl.cdiv(n, tm) * tm
    if n_pad != n:
        title = jnp.pad(title, ((0, n_pad - n), (0, 0)))
        content = jnp.pad(content, ((0, n_pad - n), (0, 0)))

    out = pl.pallas_call(
        functools.partial(_news_node_kernel, use_bf16=use_bf16),
        out_shape=jax.ShapeDtypeStruct((n_pad, hidden), jnp.float32),
        grid_spec=pltpu.PrefetchScalarGridSpec(
            num_scalar_prefetch=0,
            grid=(n_pad // tm,),
            in_specs=[
                pl.BlockSpec((tm, e_t), lambda i: (i, 0)),      # title rows
                pl.BlockSpec((tm, e_c), lambda i: (i, 0)),      # content rows
                pl.BlockSpec((e_t, h_half), lambda i: (0, 0)),  # Wt (resident)
                pl.BlockSpec((1, h_half), lambda i: (0, 0)),    # bt
                pl.BlockSpec((e_c, h_half), lambda i: (0, 0)),  # Wc (resident)
                pl.BlockSpec((1, h_half), lambda i: (0, 0)),    # bc
            ],
            out_specs=pl.BlockSpec((tm, hidden), lambda i: (i, 0)),
        ),
        compiler_params=pltpu.CompilerParams(
            dimension_semantics=("parallel",)),
    )(title, content, wt, bt.reshape(1, h_half), wc, bc.reshape(1, h_half))
    return out[:n]


if __name__ == "__main__":
    EMB, HID = 32, 32
    N = 8

    key = jax.random.PRNGKey(0)
    k_t, k_c, k_wt, k_bt, k_wc, k_bc = jax.random.split(key, 6)

    title = jax.random.normal(k_t, (N, EMB), jnp.float32)
    content = jax.random.normal(k_c, (N, EMB), jnp.float32)
    params = {
        "title": {
            "w": jax.random.normal(k_wt, (EMB, HID // 2), jnp.float32) * 0.02,
            "b": jax.random.normal(k_bt, (HID // 2,), jnp.float32) * 0.02,
        },
        "content": {
            "w": jax.random.normal(k_wc, (EMB, HID // 2), jnp.float32) * 0.02,
            "b": jax.random.normal(k_bc, (HID // 2,), jnp.float32) * 0.02,
        },
    }

    out = news_node_forward(title, content, params)
    out = jax.block_until_ready(out)

    # Pure-JAX reference of the NewsNode forward.
    ref = jnp.concatenate(
        [title @ params["title"]["w"] + params["title"]["b"],
         content @ params["content"]["w"] + params["content"]["b"]], axis=-1)

    assert out.shape == (N, HID)
    assert bool(jnp.all(jnp.isfinite(out)))
    assert bool(jnp.allclose(out, ref, atol=1e-5, rtol=1e-5))

    # Also exercise the padded / row-tiled path (row count not a multiple of 8).
    out2 = jax.block_until_ready(news_node_forward(title[:5], content[:5], params))
    assert out2.shape == (5, HID)
    assert bool(jnp.allclose(out2, ref[:5], atol=1e-5, rtol=1e-5))

    print("KERNEL_OK")
</pallas_src>

<mosaic_0001>
module attributes {stable_mosaic.version = 11 : i64} {
  func.func @_news_node_kernel(%arg0: i32, %arg1: memref<8x32xf32, #tpu.memory_space<vmem>>, %arg2: memref<8x32xf32, #tpu.memory_space<vmem>>, %arg3: memref<32x16xf32, #tpu.memory_space<vmem>>, %arg4: memref<1x16xf32, #tpu.memory_space<vmem>>, %arg5: memref<32x16xf32, #tpu.memory_space<vmem>>, %arg6: memref<1x16xf32, #tpu.memory_space<vmem>>, %arg7: memref<8x32xf32, #tpu.memory_space<vmem>>) attributes {dimension_semantics = [#tpu.dimension_semantics<parallel>], iteration_bounds = array<i64: 1>, scalar_prefetch = 0 : i64, scratch_operands = 0 : i64, tpu.core_type = #tpu.core_type<tc>, window_params = [{transform_indices = @transform_0, window_bounds = array<i64: 8, 32>}, {transform_indices = @transform_1, window_bounds = array<i64: 8, 32>}, {pipeline_mode = #tpu.pipeline_mode<synchronous>, transform_indices = @transform_2, window_bounds = array<i64: 32, 16>}, {pipeline_mode = #tpu.pipeline_mode<synchronous>, transform_indices = @transform_3, window_bounds = array<i64: 1, 16>}, {pipeline_mode = #tpu.pipeline_mode<synchronous>, transform_indices = @transform_4, window_bounds = array<i64: 32, 16>}, {pipeline_mode = #tpu.pipeline_mode<synchronous>, transform_indices = @transform_5, window_bounds = array<i64: 1, 16>}, {transform_indices = @transform_6, window_bounds = array<i64: 8, 32>}]} {
    %c0 = arith.constant 0 : index
    %c0_0 = arith.constant 0 : index
    %0 = vector.load %arg1[%c0, %c0_0] : memref<8x32xf32, #tpu.memory_space<vmem>>, vector<8x32xf32>
    %c0_1 = arith.constant 0 : index
    %c0_2 = arith.constant 0 : index
    %1 = vector.load %arg3[%c0_1, %c0_2] : memref<32x16xf32, #tpu.memory_space<vmem>>, vector<32x16xf32>
    %c0_3 = arith.constant 0 : index
    %c0_4 = arith.constant 0 : index
    %2 = vector.load %arg2[%c0_3, %c0_4] : memref<8x32xf32, #tpu.memory_space<vmem>>, vector<8x32xf32>
    %c0_5 = arith.constant 0 : index
    %c0_6 = arith.constant 0 : index
    %3 = vector.load %arg5[%c0_5, %c0_6] : memref<32x16xf32, #tpu.memory_space<vmem>>, vector<32x16xf32>
    %cst = arith.constant dense<0.000000e+00> : vector<8x16xf32>
    %4 = tpu.matmul %0, %1, %cst {dimension_numbers = #tpu.dot_dimension_numbers<[1], [0], [0], [1], [0, 0, 1, 1], [], []>} : vector<8x32xf32>, vector<32x16xf32>, vector<8x16xf32> -> vector<8x16xf32>
    %c0_7 = arith.constant 0 : index
    %c0_8 = arith.constant 0 : index
    %5 = vector.load %arg4[%c0_7, %c0_8] : memref<1x16xf32, #tpu.memory_space<vmem>>, vector<1x16xf32>
    %6 = vector.broadcast %5 : vector<1x16xf32> to vector<8x16xf32>
    %7 = arith.addf %4, %6 : vector<8x16xf32>
    %cst_9 = arith.constant dense<0.000000e+00> : vector<8x16xf32>
    %8 = tpu.matmul %2, %3, %cst_9 {dimension_numbers = #tpu.dot_dimension_numbers<[1], [0], [0], [1], [0, 0, 1, 1], [], []>} : vector<8x32xf32>, vector<32x16xf32>, vector<8x16xf32> -> vector<8x16xf32>
    %c0_10 = arith.constant 0 : index
    %c0_11 = arith.constant 0 : index
    %9 = vector.load %arg6[%c0_10, %c0_11] : memref<1x16xf32, #tpu.memory_space<vmem>>, vector<1x16xf32>
    %10 = vector.broadcast %9 : vector<1x16xf32> to vector<8x16xf32>
    %11 = arith.addf %8, %10 : vector<8x16xf32>
    %12 = tpu.concatenate %7, %11 in 1 : vector<8x16xf32>, vector<8x16xf32> -> vector<8x32xf32>
    %c0_12 = arith.constant 0 : index
    %c0_13 = arith.constant 0 : index
    %13 = vector.load %arg7[%c0_12, %c0_13] : memref<8x32xf32, #tpu.memory_space<vmem>>, vector<8x32xf32>
    tpu.vector_store %arg7[%c0_12, %c0_13], %12 {strides = array<i32>} : memref<8x32xf32, #tpu.memory_space<vmem>>, vector<8x32xf32>,
    return
  }
  func.func @transform_0(%arg0: i32) -> (i32, i32) {
    %c0_i32 = arith.constant 0 : i32
    %c0_i32_0 = arith.constant 0 : i32
    return %arg0, %c0_i32 : i32, i32
  }
  func.func @transform_1(%arg0: i32) -> (i32, i32) {
    %c0_i32 = arith.constant 0 : i32
    %c0_i32_0 = arith.constant 0 : i32
    return %arg0, %c0_i32 : i32, i32
  }
  func.func @transform_2(%arg0: i32) -> (i32, i32) {
    %c0_i32 = arith.constant 0 : i32
    %c0_i32_0 = arith.constant 0 : i32
    %c0_i32_1 = arith.constant 0 : i32
    return %c0_i32, %c0_i32_0 : i32, i32
  }
  func.func @transform_3(%arg0: i32) -> (i32, i32) {
    %c0_i32 = arith.constant 0 : i32
    %c0_i32_0 = arith.constant 0 : i32
    %c0_i32_1 = arith.constant 0 : i32
    return %c0_i32, %c0_i32_0 : i32, i32
  }
  func.func @transform_4(%arg0: i32) -> (i32, i32) {
    %c0_i32 = arith.constant 0 : i32
    %c0_i32_0 = arith.constant 0 : i32
    %c0_i32_1 = arith.constant 0 : i32
    return %c0_i32, %c0_i32_0 : i32, i32
  }
  func.func @transform_5(%arg0: i32) -> (i32, i32) {
    %c0_i32 = arith.constant 0 : i32
    %c0_i32_0 = arith.constant 0 : i32
    %c0_i32_1 = arith.constant 0 : i32
    return %c0_i32, %c0_i32_0 : i32, i32
  }
  func.func @transform_6(%arg0: i32) -> (i32, i32) {
    %c0_i32 = arith.constant 0 : i32
    %c0_i32_0 = arith.constant 0 : i32
    return %arg0, %c0_i32 : i32, i32
  }
}

</mosaic_0001>

<bundles_post_ra>
// kernel: tpu_custom_call.1
= control target key start
LH: loop header
LB: loop body
LE: loop exit
PB: predicated region body
PF: predicated region fallthrough
CT: control target
= control target key end

     0   :  { %v278_v1 = vmov 0.0   ;;  %vm279_vm0 = vmmov 0   ;;  %s361_s0 = inlined_call_operand.vmem [shape: f32[8,32], index: 0, kind: input, shape index: {}]   ;;  %s362_s1 = inlined_call_operand.vmem [shape: f32[8,32], index: 1, kind: input, shape index: {}]   ;;  %s363_s2 = inlined_call_operand.vmem [shape: f32[32,16], index: 2, kind: input, shape index: {}]   ;;  %s364_s3 = inlined_call_operand.vmem [shape: f32[1,16], index: 3, kind: input, shape index: {}]   ;;  %s365_s4 = inlined_call_operand.vmem [shape: f32[32,16], index: 4, kind: input, shape index: {}]   ;;  %s366_s5 = inlined_call_operand.vmem [shape: f32[1,16], index: 5, kind: input, shape index: {}]   ;;  %s367_s6 = inlined_call_operand.hbm [shape: f32[8,32], index: 6, kind: output, shape index: {}]  }
   0x1   :  { %v33_v0 = vld [vmem:[%s365_s4 + $0x18] sm:$0xff]  ;;  %241 = vmatprep.subr.mxu1 %v278_v1  ;;  %v32_v2 = vld [vmem:[%s365_s4 + $0x10] sm:$0xff]  ;;  %249 = vmatprep.mubr.msk.f32.mxu1 %vm279_vm0, %v278_v1  ;;  %v31_v5 = vld [vmem:[%s365_s4 + $0x8] sm:$0xff] }
   0x2   :  { %v28_v3 = vld [vmem:[%s363_s2 + $0x18] sm:$0xff]  ;;  %242 = vmatpush3.msra.mxu1 %v33_v0  ;;  %230 = vmatprep.subr.mxu0 %v278_v1  ;;  %v27_v4 = vld [vmem:[%s363_s2 + $0x10] sm:$0xff] }
   0x3   :  { %243 = vmatprep.subr.mxu1 %v278_v1  ;;  %231 = vmatpush3.msra.mxu0 %v28_v3 }
   0x4   :  { %11 = vsyncpa [#allocation3], 0  ;;  %244 = vmatpush3.msra.mxu1 %v32_v2  ;;  %232 = vmatprep.subr.mxu0 %v278_v1  ;;  %v26_v6 = vld [vmem:[%s363_s2 + $0x8] sm:$0xff]  ;;  %v30_v7 = vld [vmem:[%s365_s4] sm:$0xff]  ;;  %vm41_vm1 = vcmask 261120   ;;  %s281_s18 = smov [#allocation2]  }
   0x5   :  { %245 = vmatprep.subr.mxu1 %v278_v1  ;;  %233 = vmatpush3.msra.mxu0 %v27_v4  ;;  %v29_v8 = vld [vmem:[%s362_s1] sm:$0xff]  ;;  %s208_s19 = sshll.u32 %s281_s18, 4  ;;  %vm199_vm2 = vcmask 130048   ;;  %s209_s19 = int_to_ptr.vmem [resolvable:$true] %s208_s19 }
   0x6   :  { %246 = vmatpush3.msra.mxu1 %v31_v5  ;;  %234 = vmatprep.subr.mxu0 %v278_v1  ;;  %v25_v9 = vld [vmem:[%s363_s2] sm:$0xff]  ;;  %s280_s2 = smov 16   ;;  %p261_p1 = scmp.lt.s32.totalorder %s209_s19, %s209_s19 }
   0x7   :  { %247 = vmatprep.subr.mxu1 %v278_v1  ;;  %235 = vmatpush3.msra.mxu0 %v26_v6  ;;  %v24_v10 = vld [vmem:[%s361_s0] sm:$0xff] }
   0x8   :  { %248 = vmatpush3.msra.mxu1 %v30_v7  ;;  %236 = vmatprep.subr.mxu0 %v278_v1  ;;  %v218_v11 = vld [vmem:[%s366_s5] ss:$0 sm:$0xff]  ;;  %s256_s5 = scalar_lea.vmem %s209_s19, 128 }
   0x9   :  { %250 = vmatmul.mubr.msk.f32.vlgmr.msra.gmra.mxu1 %vm41_vm1, %v29_v8  ;;  %237 = vmatpush3.msra.mxu0 %v25_v9  ;;  %v216_v17 = vld [vmem:[%s364_s3] ss:$0 sm:$0xff]  ;;  %p257_p0 = scmp.ne.s32.totalorder %s209_s19, %s256_s5  ;;  %p262_p2 = scmp.lt.s32.totalorder %s256_s5, %s256_s5 }
   0xa   :  { %238 = vmatprep.mubr.msk.f32.mxu0 %vm279_vm0, %v278_v1 }
   0xb   :  { %239 = vmatmul.mubr.msk.f32.vlgmr.msra.gmra.mxu0 %vm41_vm1, %v24_v10  ;;  %p263_p3 = por %p262_p2, %p261_p1 }
   0xd   :  { %p264_p4 = pnand %p263_p3, %p257_p0 }
  0xc9   :  { %v191_v12 = vpop.f32.mrf.mxu1 }
  0xca   :  { %v192_v13 = vadd.f32 %v218_v11, %v191_v12 }
  0xcb   :  { %v251_v14 = vpop.f32.mrf.mxu1  ;;  %v111_v15 = vpop.f32.mrf.mxu0 }
  0xcc   :  { %196 = vrot.lane.b32.xlu0 %v192_v13, %s280_s2  ;;  %v112_v18 = vadd.f32 %v216_v17, %v111_v15 }
  0xcd   :  { %v240_v16 = vpop.f32.mrf.mxu0 }
 0x13e   :  { %v197_v19 = vpop.permute.xlu0 %196 }
 0x13f   :  { %v200_v20 = vsel %vm199_vm2, %v112_v18, %v197_v19 }
 0x140   :  { %201 = vst.msk [vmem:[#allocation2] sm:$0xff] %vm41_vm1, %v200_v20 }
 0x141   :  { %267 = shalt.err (!%p264_p4)
}
 0x142   :  { %211 = dma.vmem_to_hbm [thread:$0]  %s209_s19, 128, %s367_s6, [#allocation3]  }
 0x143   :  { %276 = dma.done.wait [#allocation3], 128  }
 0x144   :  { %277 = vsyncadd [#allocation3], 4294967168 }
 0x145   :  { %215 = vsyncpa [#allocation3], 1 }

</bundles_post_ra>
